<compile_context>
chip_gen: v7x
topology: tpu7x:2x2x1
jax: 0.10.0
libtpu: 0.0.40
codegen_flags: <defaults>
</compile_context>

<pallas_src>
import functools

import numpy as np
import jax
import jax.numpy as jnp
from jax.experimental import pallas as pl
from jax.experimental.pallas import tpu as pltpu


HIDDEN = 32


def _cdiv(a, b):
    return -(-a // b)


def _round8(n):
    return _cdiv(n, 8) * 8


# ---------------------------------------------------------------------------
# Kernel: fused 4-layer MLP on one (row_tile, pack*D) lane-dense tile.
# Each row packs `pack` independent samples; weights are block-diagonal
# (pack copies of the original layer weight), so a single plain matmul applies
# the layer to all packed samples at once and the output stays lane-dense.
# MXU inputs are bf16, accumulation is f32, bias add + ReLU stay f32 on the
# VPU (v5e has no bf16 VPU/EUP).
# ---------------------------------------------------------------------------
def _autoencoder_kernel(x_ref,
                        w1_ref, b1_ref,
                        w2_ref, b2_ref,
                        w3_ref, b3_ref,
                        w4_ref, b4_ref,
                        out_ref):
    x = x_ref[...].astype(jnp.bfloat16)

    # ---- encoder ----
    h1 = jnp.dot(x, w1_ref[...], preferred_element_type=jnp.float32) + b1_ref[...]
    h1 = jnp.maximum(h1, 0.0)
    z = jnp.dot(h1.astype(jnp.bfloat16), w2_ref[...],
                preferred_element_type=jnp.float32) + b2_ref[...]

    # ---- decoder ----
    h2 = jnp.dot(z.astype(jnp.bfloat16), w3_ref[...],
                 preferred_element_type=jnp.float32) + b3_ref[...]
    h2 = jnp.maximum(h2, 0.0)
    y = jnp.dot(h2.astype(jnp.bfloat16), w4_ref[...],
                preferred_element_type=jnp.float32) + b4_ref[...]

    out_ref[...] = y.astype(out_ref.dtype)


# ---------------------------------------------------------------------------
# Parameter packing (done once, outside the kernel).
# ---------------------------------------------------------------------------
def _pack_factor(input_dim):
    # Pack enough samples per row to fill a full 128-lane vreg row.
    # NOTE: falls back to pack=1 (masked 16/128-lane stores, big perf cliff)
    # when 128 % input_dim != 0 -- numerics stay correct.
    return 128 // input_dim if 128 % input_dim == 0 else 1


def pack_params(params, input_dim):
    """Block-diagonal bf16 weights + lane-tiled f32 biases for the packed layout."""
    pack = _pack_factor(input_dim)
    eye = jnp.eye(pack, dtype=jnp.bfloat16)

    def blk(w):   # (in, out) -> (pack*in, pack*out) block diagonal, bf16
        return jnp.kron(eye, w.astype(jnp.bfloat16))

    def tile_b(b):  # (1, out) -> (1, pack*out), f32
        return jnp.tile(b.astype(jnp.float32), (1, pack))

    return {
        "w1": blk(params["w1"]), "b1": tile_b(params["b1"]),
        "w2": blk(params["w2"]), "b2": tile_b(params["b2"]),
        "w3": blk(params["w3"]), "b3": tile_b(params["b3"]),
        "w4": blk(params["w4"]), "b4": tile_b(params["b4"]),
    }


# ---------------------------------------------------------------------------
# Forward wrapper.
# ---------------------------------------------------------------------------
def autoencoder_forward(x, packed, *, row_tile=1024, out_dtype=jnp.float32,
                        single_buffer_weights=True):
    """x: (B, input_dim) f32.  packed: output of pack_params.  Returns (B, input_dim)."""
    B, D = x.shape
    pack = packed["w1"].shape[0] // D       # samples packed per row
    lane_w = pack * D                       # packed feature width (128 when 128 % D == 0)

    # Lane-dense packed view.  Zero-copy row-major reshape when B % pack == 0;
    # otherwise pad to the next multiple of `pack` (one extra HBM pass -- pad B
    # upstream if that matters).
    if B % pack:
        b_pad = _cdiv(B, pack) * pack
        x = jnp.pad(x, ((0, b_pad - B), (0, 0)))
    else:
        b_pad = B
    rows = b_pad // pack
    x_view = x.reshape(rows, lane_w)

    # Tile selection: big tiles amortize per-step overhead; cap at 2048 rows so
    # double-buffered I/O tiles + f32 intermediates stay inside v5e's 16 MiB
    # scoped VMEM default and v7x's 64 MiB physical VMEM.
    row_tile = max(8, min((row_tile // 8) * 8, 2048, _round8(rows)))
    # Keep >= 2 grid steps when there is enough work so the "parallel" batch
    # axis is sharded over both v7x TensorCores (no-op on v5e/v6e).
    if rows > 16:
        row_tile = min(row_tile, _round8(_cdiv(rows, 2)))
    num_steps = _cdiv(rows, row_tile)       # ragged last block handled by Pallas

    def row_map(i):          # x / out tiles march down the batch axis (pipelined)
        return (i, 0)

    def pinned_map(i):       # weights / biases: same block every step -> VMEM resident
        return (0, 0)

    def pinned_spec(arr):
        if single_buffer_weights:
            # Constant index_map: a single resident buffer is enough.
            return pl.BlockSpec(arr.shape, pinned_map, pipeline_mode=pl.Buffered(1))
        return pl.BlockSpec(arr.shape, pinned_map)

    in_specs = [
        pl.BlockSpec((row_tile, lane_w), row_map),          # x tile
        pinned_spec(packed["w1"]), pinned_spec(packed["b1"]),
        pinned_spec(packed["w2"]), pinned_spec(packed["b2"]),
        pinned_spec(packed["w3"]), pinned_spec(packed["b3"]),
        pinned_spec(packed["w4"]), pinned_spec(packed["b4"]),
    ]
    out_spec = pl.BlockSpec((row_tile, lane_w), row_map)

    # Advisory cost: this kernel is bytes-bound, not flops-bound.
    hid = packed["w1"].shape[1]
    zl = packed["w2"].shape[1]
    weight_bytes = sum(int(v.size) * v.dtype.itemsize for v in packed.values())
    cost = pl.CostEstimate(
        flops=2 * rows * (lane_w * hid + hid * zl + zl * hid + hid * lane_w),
        transcendentals=0,
        bytes_accessed=rows * lane_w * (4 + np.dtype(out_dtype).itemsize) + weight_bytes,
    )

    out_view = pl.pallas_call(
        _autoencoder_kernel,
        out_shape=jax.ShapeDtypeStruct((rows, lane_w), out_dtype),
        grid=(num_steps,),
        in_specs=in_specs,
        out_specs=out_spec,
        compiler_params=pltpu.CompilerParams(
            dimension_semantics=("parallel",),     # batch axis: megacore-shardable
            vmem_limit_bytes=32 * 1024 * 1024,     # headroom for 2048-row tiles, safe on all chips
        ),
        cost_estimate=cost,
    )(x_view,
      packed["w1"], packed["b1"],
      packed["w2"], packed["b2"],
      packed["w3"], packed["b3"],
      packed["w4"], packed["b4"])

    out = out_view.reshape(b_pad, D)                # zero-copy view back to (B, D)
    return out if b_pad == B else out[:B]


# ---------------------------------------------------------------------------
# Init + references.
# ---------------------------------------------------------------------------
def init_params(key, input_dim, latent_dim=5, hidden=HIDDEN):
    """Shapes match the nn.Linear layers, stored transposed: y = x @ W + b."""
    ks = jax.random.split(key, 8)

    def lin(kw, kb, fan_in, fan_out):
        bound = 1.0 / jnp.sqrt(jnp.float32(fan_in))
        w = jax.random.uniform(kw, (fan_in, fan_out), jnp.float32, -bound, bound)
        b = jax.random.uniform(kb, (1, fan_out), jnp.float32, -bound, bound)
        return w, b

    w1, b1 = lin(ks[0], ks[1], input_dim, hidden)
    w2, b2 = lin(ks[2], ks[3], hidden, latent_dim)
    w3, b3 = lin(ks[4], ks[5], latent_dim, hidden)
    w4, b4 = lin(ks[6], ks[7], hidden, input_dim)
    return {"w1": w1, "b1": b1, "w2": w2, "b2": b2,
            "w3": w3, "b3": b3, "w4": w4, "b4": b4}


def reference_forward_f32(x, p):
    """Pure-f32 reference (matches the PyTorch module's math)."""
    h = jnp.maximum(x @ p["w1"] + p["b1"], 0.0)
    z = h @ p["w2"] + p["b2"]
    h = jnp.maximum(z @ p["w3"] + p["b3"], 0.0)
    return h @ p["w4"] + p["b4"]


def reference_forward_bf16(x, p):
    """Emulates the kernel's bf16-MXU / f32-accumulate arithmetic."""
    bf = jnp.bfloat16

    def dot(a, w):
        return jnp.dot(a.astype(bf), w.astype(bf), preferred_element_type=jnp.float32)

    h = jnp.maximum(dot(x, p["w1"]) + p["b1"], 0.0)
    z = dot(h, p["w2"]) + p["b2"]
    h = jnp.maximum(dot(z, p["w3"]) + p["b3"], 0.0)
    return dot(h, p["w4"]) + p["b4"]


# ---------------------------------------------------------------------------
# Main.
# ---------------------------------------------------------------------------
if __name__ == "__main__":
    key = jax.random.PRNGKey(0)
    k_p, k1, k2, k3 = jax.random.split(key, 4)

    input_dim = 16    # tabular feature count (X_drop without 'label')
    latent_dim = 5

    params = init_params(k_p, input_dim, latent_dim)
    packed = pack_params(params, input_dim)

    def make_forward(single_buffer):
        return jax.jit(functools.partial(
            autoencoder_forward, row_tile=1024,
            single_buffer_weights=single_buffer))

    def check(x, out):
        assert out.shape == x.shape
        # exact-arithmetic check (same bf16-MXU / f32-accumulate math)
        assert jnp.allclose(out, reference_forward_bf16(x, params), atol=1e-4, rtol=1e-4)
        # semantic check vs pure-f32 PyTorch math
        assert jnp.allclose(out, reference_forward_f32(x, params), atol=3e-2, rtol=3e-2)

    # Test batches: zero-copy 2-step grid, ragged last row-block, B % pack != 0 fallback.
    x_a = jax.random.normal(k1, (256, input_dim), jnp.float32)
    x_b = jax.random.normal(k2, (200, input_dim), jnp.float32)
    x_c = jax.random.normal(k3, (10, input_dim), jnp.float32)

    forward = make_forward(True)
    try:
        out_a = jax.block_until_ready(forward(x_a, packed))
        check(x_a, out_a)
    except Exception:
        # pl.Buffered(1) pinning not usable in this build -> default double buffering.
        forward = make_forward(False)
        out_a = jax.block_until_ready(forward(x_a, packed))
        check(x_a, out_a)

    for x in (x_b, x_c):
        out = jax.block_until_ready(forward(x, packed))
        check(x, out)

    print("KERNEL_OK")
</pallas_src>

<mosaic_0001>
module attributes {stable_mosaic.version = 11 : i64} {
  func.func @_autoencoder_kernel(%arg0: i32, %arg1: memref<16x128xf32, #tpu.memory_space<vmem>>, %arg2: memref<128x256xbf16, #tpu.memory_space<vmem>>, %arg3: memref<1x256xf32, #tpu.memory_space<vmem>>, %arg4: memref<256x40xbf16, #tpu.memory_space<vmem>>, %arg5: memref<1x40xf32, #tpu.memory_space<vmem>>, %arg6: memref<40x256xbf16, #tpu.memory_space<vmem>>, %arg7: memref<1x256xf32, #tpu.memory_space<vmem>>, %arg8: memref<256x128xbf16, #tpu.memory_space<vmem>>, %arg9: memref<1x128xf32, #tpu.memory_space<vmem>>, %arg10: memref<16x128xf32, #tpu.memory_space<vmem>>) attributes {dimension_semantics = [#tpu.dimension_semantics<parallel>], iteration_bounds = array<i64: 2>, scalar_prefetch = 0 : i64, scratch_operands = 0 : i64, tpu.core_type = #tpu.core_type<tc>, window_params = [{transform_indices = @transform_0, window_bounds = array<i64: 16, 128>}, {pipeline_mode = #tpu.pipeline_mode<synchronous>, transform_indices = @transform_1, window_bounds = array<i64: 128, 256>}, {pipeline_mode = #tpu.pipeline_mode<synchronous>, transform_indices = @transform_2, window_bounds = array<i64: 1, 256>}, {pipeline_mode = #tpu.pipeline_mode<synchronous>, transform_indices = @transform_3, window_bounds = array<i64: 256, 40>}, {pipeline_mode = #tpu.pipeline_mode<synchronous>, transform_indices = @transform_4, window_bounds = array<i64: 1, 40>}, {pipeline_mode = #tpu.pipeline_mode<synchronous>, transform_indices = @transform_5, window_bounds = array<i64: 40, 256>}, {pipeline_mode = #tpu.pipeline_mode<synchronous>, transform_indices = @transform_6, window_bounds = array<i64: 1, 256>}, {pipeline_mode = #tpu.pipeline_mode<synchronous>, transform_indices = @transform_7, window_bounds = array<i64: 256, 128>}, {pipeline_mode = #tpu.pipeline_mode<synchronous>, transform_indices = @transform_8, window_bounds = array<i64: 1, 128>}, {transform_indices = @transform_9, window_bounds = array<i64: 16, 128>}]} {
    %c0 = arith.constant 0 : index
    %c0_0 = arith.constant 0 : index
    %0 = vector.load %arg1[%c0, %c0_0] : memref<16x128xf32, #tpu.memory_space<vmem>>, vector<16x128xf32>
    %1 = arith.truncf %0 : vector<16x128xf32> to vector<16x128xbf16>
    %c0_1 = arith.constant 0 : index
    %c0_2 = arith.constant 0 : index
    %2 = vector.load %arg2[%c0_1, %c0_2] : memref<128x256xbf16, #tpu.memory_space<vmem>>, vector<128x256xbf16>
    %cst = arith.constant dense<0.000000e+00> : vector<16x256xf32>
    %3 = tpu.matmul %1, %2, %cst {dimension_numbers = #tpu.dot_dimension_numbers<[1], [0], [0], [1], [0, 0, 1, 1], [], []>} : vector<16x128xbf16>, vector<128x256xbf16>, vector<16x256xf32> -> vector<16x256xf32>
    %c0_3 = arith.constant 0 : index
    %c0_4 = arith.constant 0 : index
    %4 = vector.load %arg3[%c0_3, %c0_4] : memref<1x256xf32, #tpu.memory_space<vmem>>, vector<1x256xf32>
    %5 = vector.broadcast %4 : vector<1x256xf32> to vector<16x256xf32>
    %6 = arith.addf %3, %5 : vector<16x256xf32>
    %cst_5 = arith.constant 0.000000e+00 : f32
    %7 = vector.broadcast %cst_5 : f32 to vector<16x256xf32>
    %8 = arith.maximumf %6, %7 : vector<16x256xf32>
    %9 = arith.truncf %8 : vector<16x256xf32> to vector<16x256xbf16>
    %c0_6 = arith.constant 0 : index
    %c0_7 = arith.constant 0 : index
    %10 = vector.load %arg4[%c0_6, %c0_7] : memref<256x40xbf16, #tpu.memory_space<vmem>>, vector<256x40xbf16>
    %cst_8 = arith.constant dense<0.000000e+00> : vector<16x40xf32>
    %11 = tpu.matmul %9, %10, %cst_8 {dimension_numbers = #tpu.dot_dimension_numbers<[1], [0], [0], [1], [0, 0, 1, 1], [], []>} : vector<16x256xbf16>, vector<256x40xbf16>, vector<16x40xf32> -> vector<16x40xf32>
    %c0_9 = arith.constant 0 : index
    %c0_10 = arith.constant 0 : index
    %12 = vector.load %arg5[%c0_9, %c0_10] : memref<1x40xf32, #tpu.memory_space<vmem>>, vector<1x40xf32>
    %13 = vector.broadcast %12 : vector<1x40xf32> to vector<16x40xf32>
    %14 = arith.addf %11, %13 : vector<16x40xf32>
    %15 = arith.truncf %14 : vector<16x40xf32> to vector<16x40xbf16>
    %c0_11 = arith.constant 0 : index
    %c0_12 = arith.constant 0 : index
    %16 = vector.load %arg6[%c0_11, %c0_12] : memref<40x256xbf16, #tpu.memory_space<vmem>>, vector<40x256xbf16>
    %cst_13 = arith.constant dense<0.000000e+00> : vector<16x256xf32>
    %17 = tpu.matmul %15, %16, %cst_13 {dimension_numbers = #tpu.dot_dimension_numbers<[1], [0], [0], [1], [0, 0, 1, 1], [], []>} : vector<16x40xbf16>, vector<40x256xbf16>, vector<16x256xf32> -> vector<16x256xf32>
    %c0_14 = arith.constant 0 : index
    %c0_15 = arith.constant 0 : index
    %18 = vector.load %arg7[%c0_14, %c0_15] : memref<1x256xf32, #tpu.memory_space<vmem>>, vector<1x256xf32>
    %19 = vector.broadcast %18 : vector<1x256xf32> to vector<16x256xf32>
    %20 = arith.addf %17, %19 : vector<16x256xf32>
    %cst_16 = arith.constant 0.000000e+00 : f32
    %21 = vector.broadcast %cst_16 : f32 to vector<16x256xf32>
    %22 = arith.maximumf %20, %21 : vector<16x256xf32>
    %23 = arith.truncf %22 : vector<16x256xf32> to vector<16x256xbf16>
    %c0_17 = arith.constant 0 : index
    %c0_18 = arith.constant 0 : index
    %24 = vector.load %arg8[%c0_17, %c0_18] : memref<256x128xbf16, #tpu.memory_space<vmem>>, vector<256x128xbf16>
    %cst_19 = arith.constant dense<0.000000e+00> : vector<16x128xf32>
    %25 = tpu.matmul %23, %24, %cst_19 {dimension_numbers = #tpu.dot_dimension_numbers<[1], [0], [0], [1], [0, 0, 1, 1], [], []>} : vector<16x256xbf16>, vector<256x128xbf16>, vector<16x128xf32> -> vector<16x128xf32>
    %c0_20 = arith.constant 0 : index
    %c0_21 = arith.constant 0 : index
    %26 = vector.load %arg9[%c0_20, %c0_21] : memref<1x128xf32, #tpu.memory_space<vmem>>, vector<1x128xf32>
    %27 = vector.broadcast %26 : vector<1x128xf32> to vector<16x128xf32>
    %28 = arith.addf %25, %27 : vector<16x128xf32>
    %c0_22 = arith.constant 0 : index
    %c0_23 = arith.constant 0 : index
    %29 = vector.load %arg10[%c0_22, %c0_23] : memref<16x128xf32, #tpu.memory_space<vmem>>, vector<16x128xf32>
    tpu.vector_store %arg10[%c0_22, %c0_23], %28 {strides = array<i32>} : memref<16x128xf32, #tpu.memory_space<vmem>>, vector<16x128xf32>,
    return
  }
  func.func @transform_0(%arg0: i32) -> (i32, i32) {
    %c0_i32 = arith.constant 0 : i32
    %c0_i32_0 = arith.constant 0 : i32
    return %arg0, %c0_i32 : i32, i32
  }
  func.func @transform_1(%arg0: i32) -> (i32, i32) {
    %c0_i32 = arith.constant 0 : i32
    %c0_i32_0 = arith.constant 0 : i32
    %c0_i32_1 = arith.constant 0 : i32
    return %c0_i32, %c0_i32_0 : i32, i32
  }
  func.func @transform_2(%arg0: i32) -> (i32, i32) {
    %c0_i32 = arith.constant 0 : i32
    %c0_i32_0 = arith.constant 0 : i32
    %c0_i32_1 = arith.constant 0 : i32
    return %c0_i32, %c0_i32_0 : i32, i32
  }
  func.func @transform_3(%arg0: i32) -> (i32, i32) {
    %c0_i32 = arith.constant 0 : i32
    %c0_i32_0 = arith.constant 0 : i32
    %c0_i32_1 = arith.constant 0 : i32
    return %c0_i32, %c0_i32_0 : i32, i32
  }
  func.func @transform_4(%arg0: i32) -> (i32, i32) {
    %c0_i32 = arith.constant 0 : i32
    %c0_i32_0 = arith.constant 0 : i32
    %c0_i32_1 = arith.constant 0 : i32
    return %c0_i32, %c0_i32_0 : i32, i32
  }
  func.func @transform_5(%arg0: i32) -> (i32, i32) {
    %c0_i32 = arith.constant 0 : i32
    %c0_i32_0 = arith.constant 0 : i32
    %c0_i32_1 = arith.constant 0 : i32
    return %c0_i32, %c0_i32_0 : i32, i32
  }
  func.func @transform_6(%arg0: i32) -> (i32, i32) {
    %c0_i32 = arith.constant 0 : i32
    %c0_i32_0 = arith.constant 0 : i32
    %c0_i32_1 = arith.constant 0 : i32
    return %c0_i32, %c0_i32_0 : i32, i32
  }
  func.func @transform_7(%arg0: i32) -> (i32, i32) {
    %c0_i32 = arith.constant 0 : i32
    %c0_i32_0 = arith.constant 0 : i32
    %c0_i32_1 = arith.constant 0 : i32
    return %c0_i32, %c0_i32_0 : i32, i32
  }
  func.func @transform_8(%arg0: i32) -> (i32, i32) {
    %c0_i32 = arith.constant 0 : i32
    %c0_i32_0 = arith.constant 0 : i32
    %c0_i32_1 = arith.constant 0 : i32
    return %c0_i32, %c0_i32_0 : i32, i32
  }
  func.func @transform_9(%arg0: i32) -> (i32, i32) {
    %c0_i32 = arith.constant 0 : i32
    %c0_i32_0 = arith.constant 0 : i32
    return %arg0, %c0_i32 : i32, i32
  }
}

module attributes {stable_mosaic.version = 11 : i64} {
  func.func @_autoencoder_kernel(%arg0: i32, %arg1: memref<16x128xf32, #tpu.memory_space<vmem>>, %arg2: memref<128x256xbf16, #tpu.memory_space<vmem>>, %arg3: memref<1x256xf32, #tpu.memory_space<vmem>>, %arg4: memref<256x40xbf16, #tpu.memory_space<vmem>>, %arg5: memref<1x40xf32, #tpu.memory_space<vmem>>, %arg6: memref<40x256xbf16, #tpu.memory_space<vmem>>, %arg7: memref<1x256xf32, #tpu.memory_space<vmem>>, %arg8: memref<256x128xbf16, #tpu.memory_space<vmem>>, %arg9: memref<1x128xf32, #tpu.memory_space<vmem>>, %arg10: memref<16x128xf32, #tpu.memory_space<vmem>>) attributes {dimension_semantics = [#tpu.dimension_semantics<parallel>], iteration_bounds = array<i64: 2>, scalar_prefetch = 0 : i64, scratch_operands = 0 : i64, tpu.core_type = #tpu.core_type<tc>, window_params = [{transform_indices = @transform_0, window_bounds = array<i64: 16, 128>}, {pipeline_mode = #tpu.pipeline_mode<synchronous>, transform_indices = @transform_1, window_bounds = array<i64: 128, 256>}, {pipeline_mode = #tpu.pipeline_mode<synchronous>, transform_indices = @transform_2, window_bounds = array<i64: 1, 256>}, {pipeline_mode = #tpu.pipeline_mode<synchronous>, transform_indices = @transform_3, window_bounds = array<i64: 256, 40>}, {pipeline_mode = #tpu.pipeline_mode<synchronous>, transform_indices = @transform_4, window_bounds = array<i64: 1, 40>}, {pipeline_mode = #tpu.pipeline_mode<synchronous>, transform_indices = @transform_5, window_bounds = array<i64: 40, 256>}, {pipeline_mode = #tpu.pipeline_mode<synchronous>, transform_indices = @transform_6, window_bounds = array<i64: 1, 256>}, {pipeline_mode = #tpu.pipeline_mode<synchronous>, transform_indices = @transform_7, window_bounds = array<i64: 256, 128>}, {pipeline_mode = #tpu.pipeline_mode<synchronous>, transform_indices = @transform_8, window_bounds = array<i64: 1, 128>}, {transform_indices = @transform_9, window_bounds = array<i64: 16, 128>}]} {
    %c0 = arith.constant 0 : index
    %c0_0 = arith.constant 0 : index
    %0 = vector.load %arg1[%c0, %c0_0] : memref<16x128xf32, #tpu.memory_space<vmem>>, vector<16x128xf32>
    %1 = arith.truncf %0 : vector<16x128xf32> to vector<16x128xbf16>
    %c0_1 = arith.constant 0 : index
    %c0_2 = arith.constant 0 : index
    %2 = vector.load %arg2[%c0_1, %c0_2] : memref<128x256xbf16, #tpu.memory_space<vmem>>, vector<128x256xbf16>
    %cst = arith.constant dense<0.000000e+00> : vector<16x256xf32>
    %3 = tpu.matmul %1, %2, %cst {dimension_numbers = #tpu.dot_dimension_numbers<[1], [0], [0], [1], [0, 0, 1, 1], [], []>} : vector<16x128xbf16>, vector<128x256xbf16>, vector<16x256xf32> -> vector<16x256xf32>
    %c0_3 = arith.constant 0 : index
    %c0_4 = arith.constant 0 : index
    %4 = vector.load %arg3[%c0_3, %c0_4] : memref<1x256xf32, #tpu.memory_space<vmem>>, vector<1x256xf32>
    %5 = vector.broadcast %4 : vector<1x256xf32> to vector<16x256xf32>
    %6 = arith.addf %3, %5 : vector<16x256xf32>
    %cst_5 = arith.constant 0.000000e+00 : f32
    %7 = vector.broadcast %cst_5 : f32 to vector<16x256xf32>
    %8 = arith.maximumf %6, %7 : vector<16x256xf32>
    %9 = arith.truncf %8 : vector<16x256xf32> to vector<16x256xbf16>
    %c0_6 = arith.constant 0 : index
    %c0_7 = arith.constant 0 : index
    %10 = vector.load %arg4[%c0_6, %c0_7] : memref<256x40xbf16, #tpu.memory_space<vmem>>, vector<256x40xbf16>
    %cst_8 = arith.constant dense<0.000000e+00> : vector<16x40xf32>
    %11 = tpu.matmul %9, %10, %cst_8 {dimension_numbers = #tpu.dot_dimension_numbers<[1], [0], [0], [1], [0, 0, 1, 1], [], []>} : vector<16x256xbf16>, vector<256x40xbf16>, vector<16x40xf32> -> vector<16x40xf32>
    %c0_9 = arith.constant 0 : index
    %c0_10 = arith.constant 0 : index
    %12 = vector.load %arg5[%c0_9, %c0_10] : memref<1x40xf32, #tpu.memory_space<vmem>>, vector<1x40xf32>
    %13 = vector.broadcast %12 : vector<1x40xf32> to vector<16x40xf32>
    %14 = arith.addf %11, %13 : vector<16x40xf32>
    %15 = arith.truncf %14 : vector<16x40xf32> to vector<16x40xbf16>
    %c0_11 = arith.constant 0 : index
    %c0_12 = arith.constant 0 : index
    %16 = vector.load %arg6[%c0_11, %c0_12] : memref<40x256xbf16, #tpu.memory_space<vmem>>, vector<40x256xbf16>
    %cst_13 = arith.constant dense<0.000000e+00> : vector<16x256xf32>
    %17 = tpu.matmul %15, %16, %cst_13 {dimension_numbers = #tpu.dot_dimension_numbers<[1], [0], [0], [1], [0, 0, 1, 1], [], []>} : vector<16x40xbf16>, vector<40x256xbf16>, vector<16x256xf32> -> vector<16x256xf32>
    %c0_14 = arith.constant 0 : index
    %c0_15 = arith.constant 0 : index
    %18 = vector.load %arg7[%c0_14, %c0_15] : memref<1x256xf32, #tpu.memory_space<vmem>>, vector<1x256xf32>
    %19 = vector.broadcast %18 : vector<1x256xf32> to vector<16x256xf32>
    %20 = arith.addf %17, %19 : vector<16x256xf32>
    %cst_16 = arith.constant 0.000000e+00 : f32
    %21 = vector.broadcast %cst_16 : f32 to vector<16x256xf32>
    %22 = arith.maximumf %20, %21 : vector<16x256xf32>
    %23 = arith.truncf %22 : vector<16x256xf32> to vector<16x256xbf16>
    %c0_17 = arith.constant 0 : index
    %c0_18 = arith.constant 0 : index
    %24 = vector.load %arg8[%c0_17, %c0_18] : memref<256x128xbf16, #tpu.memory_space<vmem>>, vector<256x128xbf16>
    %cst_19 = arith.constant dense<0.000000e+00> : vector<16x128xf32>
    %25 = tpu.matmul %23, %24, %cst_19 {dimension_numbers = #tpu.dot_dimension_numbers<[1], [0], [0], [1], [0, 0, 1, 1], [], []>} : vector<16x256xbf16>, vector<256x128xbf16>, vector<16x128xf32> -> vector<16x128xf32>
    %c0_20 = arith.constant 0 : index
    %c0_21 = arith.constant 0 : index
    %26 = vector.load %arg9[%c0_20, %c0_21] : memref<1x128xf32, #tpu.memory_space<vmem>>, vector<1x128xf32>
    %27 = vector.broadcast %26 : vector<1x128xf32> to vector<16x128xf32>
    %28 = arith.addf %25, %27 : vector<16x128xf32>
    %c0_22 = arith.constant 0 : index
    %c0_23 = arith.constant 0 : index
    %29 = vector.load %arg10[%c0_22, %c0_23] : memref<16x128xf32, #tpu.memory_space<vmem>>, vector<16x128xf32>
    tpu.vector_store %arg10[%c0_22, %c0_23], %28 {strides = array<i32>} : memref<16x128xf32, #tpu.memory_space<vmem>>, vector<16x128xf32>,
    return
  }
  func.func @transform_0(%arg0: i32) -> (i32, i32) {
    %c0_i32 = arith.constant 0 : i32
    %c0_i32_0 = arith.constant 0 : i32
    return %arg0, %c0_i32 : i32, i32
  }
  func.func @transform_1(%arg0: i32) -> (i32, i32) {
    %c0_i32 = arith.constant 0 : i32
    %c0_i32_0 = arith.constant 0 : i32
    %c0_i32_1 = arith.constant 0 : i32
    return %c0_i32, %c0_i32_0 : i32, i32
  }
  func.func @transform_2(%arg0: i32) -> (i32, i32) {
    %c0_i32 = arith.constant 0 : i32
    %c0_i32_0 = arith.constant 0 : i32
    %c0_i32_1 = arith.constant 0 : i32
    return %c0_i32, %c0_i32_0 : i32, i32
  }
  func.func @transform_3(%arg0: i32) -> (i32, i32) {
    %c0_i32 = arith.constant 0 : i32
    %c0_i32_0 = arith.constant 0 : i32
    %c0_i32_1 = arith.constant 0 : i32
    return %c0_i32, %c0_i32_0 : i32, i32
  }
  func.func @transform_4(%arg0: i32) -> (i32, i32) {
    %c0_i32 = arith.constant 0 : i32
    %c0_i32_0 = arith.constant 0 : i32
    %c0_i32_1 = arith.constant 0 : i32
    return %c0_i32, %c0_i32_0 : i32, i32
  }
  func.func @transform_5(%arg0: i32) -> (i32, i32) {
    %c0_i32 = arith.constant 0 : i32
    %c0_i32_0 = arith.constant 0 : i32
    %c0_i32_1 = arith.constant 0 : i32
    return %c0_i32, %c0_i32_0 : i32, i32
  }
  func.func @transform_6(%arg0: i32) -> (i32, i32) {
    %c0_i32 = arith.constant 0 : i32
    %c0_i32_0 = arith.constant 0 : i32
    %c0_i32_1 = arith.constant 0 : i32
    return %c0_i32, %c0_i32_0 : i32, i32
  }
  func.func @transform_7(%arg0: i32) -> (i32, i32) {
    %c0_i32 = arith.constant 0 : i32
    %c0_i32_0 = arith.constant 0 : i32
    %c0_i32_1 = arith.constant 0 : i32
    return %c0_i32, %c0_i32_0 : i32, i32
  }
  func.func @transform_8(%arg0: i32) -> (i32, i32) {
    %c0_i32 = arith.constant 0 : i32
    %c0_i32_0 = arith.constant 0 : i32
    %c0_i32_1 = arith.constant 0 : i32
    return %c0_i32, %c0_i32_0 : i32, i32
  }
  func.func @transform_9(%arg0: i32) -> (i32, i32) {
    %c0_i32 = arith.constant 0 : i32
    %c0_i32_0 = arith.constant 0 : i32
    return %arg0, %c0_i32 : i32, i32
  }
}

</mosaic_0001>

<bundles_post_ra>
// kernel: autoencoder_forward.1
= control target key start
LH: loop header
LB: loop body
LE: loop exit
PB: predicated region body
PF: predicated region fallthrough
CT: control target
= control target key end

     0   :  { %s1255_s30 = smov 0   ;;  %s1462_s0 = inlined_call_operand.vmem [shape: f32[32,128], index: 0, kind: input, shape index: {}]   ;;  %s1463_s1 = inlined_call_operand.vmem [shape: bf16[128,256], index: 1, kind: input, shape index: {}]   ;;  %s1464_s2 = inlined_call_operand.vmem [shape: f32[1,256], index: 2, kind: input, shape index: {}]   ;;  %s1465_s3 = inlined_call_operand.vmem [shape: bf16[256,40], index: 3, kind: input, shape index: {}]   ;;  %s1466_s4 = inlined_call_operand.vmem [shape: f32[1,40], index: 4, kind: input, shape index: {}]   ;;  %s1467_s5 = inlined_call_operand.vmem [shape: bf16[40,256], index: 5, kind: input, shape index: {}]   ;;  %s1468_s6 = inlined_call_operand.vmem [shape: f32[1,256], index: 6, kind: input, shape index: {}]   ;;  %s1469_s7 = inlined_call_operand.vmem [shape: bf16[256,128], index: 7, kind: input, shape index: {}]   ;;  %s1470_s8 = inlined_call_operand.vmem [shape: f32[1,128], index: 8, kind: input, shape index: {}]   ;;  %s1471_s9 = inlined_call_operand.vmem [shape: f32[32,128], index: 9, kind: output, shape index: {}]  }
   0x1 LB: > { %s1010_s10 = sadd.s32 4294967295, %s1202_s30   ;;  %p1014_p0 = scmp.ge.s32.totalorder %s1202_s30, 1  ;;  %s1202_s30 = sphi %s1255_s30, %s19_s30  }
   0x2   : > { %p288_p1 = scmp.lt.s32.totalorder %s1202_s30, 3 }
   0x4   : > { %p289_p2 = pnand %p1014_p0, %p288_p1 }
   0x5   : > { %v1132_v0 = vld [vmem:[%s1463_s1 + $0x4] ss:$8 sps:$4 sm:$0xff] (!%p289_p2)   ;;  %v1134_v1 = vld [vmem:[%s1463_s1] ss:$8 sps:$4 sm:$0xff] (!%p289_p2)   ;;  %v1204_v2 = vmov (!%p289_p2), 0   ;;  %s1015_s23 = sshll.u32 (!%p289_p2), %s1010_s10, 1  ;;  %v358_v38 = vlaneseq (!%p289_p2) }
   0x6   : > { %292 = sbr.rel (%p289_p2) target bundleno = 923 (0x39b), region = 56  ;;  %480 = vmatprep.mubr.bf16.mxu0 (!%p289_p2), %v1204_v2  ;;  %448 = vmatprep.subr.bf16.mxu0 (!%p289_p2), %v1132_v0  ;;  %v1135_v3 = vld [vmem:[%s1463_s1 + $0x14] ss:$8 sps:$4 sm:$0xff] (!%p289_p2)   ;;  %v1137_v4 = vld [vmem:[%s1463_s1 + $0x10] ss:$8 sps:$4 sm:$0xff] (!%p289_p2)   ;;  %p325_p3 = scmp.lt.s32.totalorder (!%p289_p2), %s1015_s23, 3 }
   0x7   : > { %449 = vmatpush1.bf16.msra.mxu0 (!%p289_p2), %v1134_v1  ;;  %v1138_v5 = vld [vmem:[%s1463_s1 + $0x24] ss:$8 sps:$4 sm:$0xff] (!%p289_p2)   ;;  %v1140_v6 = vld [vmem:[%s1463_s1 + $0x20] ss:$8 sps:$4 sm:$0xff] (!%p289_p2)   ;;  %v1141_v7 = vld [vmem:[%s1463_s1 + $0x34] ss:$8 sps:$4 sm:$0xff] (!%p289_p2)  }
   0x8   : > { %450 = vmatprep.subr.bf16.mxu0 (!%p289_p2), %v1135_v3  ;;  %v1143_v8 = vld [vmem:[%s1463_s1 + $0x30] ss:$8 sps:$4 sm:$0xff] (!%p289_p2)   ;;  %v1144_v9 = vld [vmem:[%s1463_s1 + $0x44] ss:$8 sps:$4 sm:$0xff] (!%p289_p2)   ;;  %v1146_v11 = vld [vmem:[%s1463_s1 + $0x40] ss:$8 sps:$4 sm:$0xff] (!%p289_p2)  }
   0x9   : > { %v1156_v10 = vld [vmem:[%s1465_s3 + $0x40] sm:$0xff] (!%p289_p2)   ;;  %v1147_v13 = vld [vmem:[%s1463_s1 + $0x54] ss:$8 sps:$4 sm:$0xff] (!%p289_p2)   ;;  %v1158_v14 = vld [vmem:[%s1465_s3 + $0x48] sm:$0xff] (!%p289_p2)   ;;  %v1373_v39 = vshrl.u32 (!%p289_p2), %v358_v38, 7  ;;  %vm720_vm0 = vcmask (!%p289_p2), 1043456  }
   0xa   : > { %v1157_v12 = vld [vmem:[%s1465_s3] sm:$0xff] (!%p289_p2)   ;;  %1079 = vmatprep.subr.bf16.mxu1 (!%p289_p2), %v1156_v10  ;;  %v1159_v15 = vld [vmem:[%s1465_s3 + $0x8] sm:$0xff] (!%p289_p2)   ;;  %v1160_v16 = vld [vmem:[%s1465_s3 + $0x50] sm:$0xff] (!%p289_p2)   ;;  %vm716_vm1 = vcmask (!%p289_p2), 326656  }
   0xb   : > { %451 = vmatpush1.bf16.msra.mxu0 (!%p289_p2), %v1137_v4  ;;  %1080 = vmatpush3.bf16.msra.mxu1 (!%p289_p2), %v1157_v12  ;;  %v1149_v17 = vld [vmem:[%s1463_s1 + $0x50] ss:$8 sps:$4 sm:$0xff] (!%p289_p2)   ;;  %v1150_v18 = vld [vmem:[%s1463_s1 + $0x64] ss:$8 sps:$4 sm:$0xff] (!%p289_p2)   ;;  %v1152_v21 = vld [vmem:[%s1463_s1 + $0x60] ss:$8 sps:$4 sm:$0xff] (!%p289_p2)  }
   0xc   : > { %452 = vmatprep.subr.bf16.mxu0 (!%p289_p2), %v1138_v5  ;;  %1081 = vmatprep.subr.bf16.mxu1 (!%p289_p2), %v1158_v14  ;;  %v1161_v19 = vld [vmem:[%s1465_s3 + $0x10] sm:$0xff] (!%p289_p2)   ;;  %v1162_v20 = vld [vmem:[%s1465_s3 + $0x58] sm:$0xff] (!%p289_p2)   ;;  %v1164_v24 = vld [vmem:[%s1465_s3 + $0x60] sm:$0xff] (!%p289_p2)   ;;  %v360_v40 = vsub.s32 (!%p289_p2), 0, %v1373_v39  ;;  %v364_v42 = vsub.s32 (!%p289_p2), 1, %v1373_v39 }
   0xd   : > { %s1473_s23 = smov (!%p325_p3, %s1015_s23), 3  ;;  %v1153_v22 = vld [vmem:[%s1463_s1 + $0x74] ss:$8 sps:$4 sm:$0xff]   ;;  %v1155_v25 = vld [vmem:[%s1463_s1 + $0x70] ss:$8 sps:$4 sm:$0xff]   ;;  %v1165_v28 = vld [vmem:[%s1465_s3 + $0x20] sm:$0xff]  }
   0xe   : > { %s1016_s29 = sshll.u32 %s1473_s23, 3  ;;  %v1163_v23 = vld [vmem:[%s1465_s3 + $0x18] sm:$0xff]   ;;  %v1166_v29 = vld [vmem:[%s1465_s3 + $0x68] sm:$0xff]   ;;  %v1168_v32 = vld [vmem:[%s1465_s3 + $0x70] sm:$0xff]  }
   0xf   : > { %453 = vmatpush1.bf16.msra.mxu0 %v1140_v6  ;;  %1082 = vmatpush3.bf16.msra.mxu1 %v1159_v15  ;;  %s328_s20 = scalar_lea.vmem %s1462_s0, %s1016_s29  ;;  %v1167_v31 = vld [vmem:[%s1465_s3 + $0x28] sm:$0xff]   ;;  %v1169_v33 = vld [vmem:[%s1465_s3 + $0x30] sm:$0xff]   ;;  %v1170_v34 = vld [vmem:[%s1465_s3 + $0x78] sm:$0xff]   ;;  %s334_s21 = scalar_lea.vmem %s1471_s9, %s1016_s29 }
  0x10   : > { %454 = vmatprep.subr.bf16.mxu0 %v1141_v7  ;;  %1083 = vmatprep.subr.bf16.mxu1 %v1160_v16  ;;  %v337_v26 = vld [vmem:[%s328_s20] sm:$0xff]  ;;  %v338_v27 = vld [vmem:[%s328_s20 + $0x8] sm:$0xff]  ;;  %v1171_v35 = vld [vmem:[%s1465_s3 + $0x38] sm:$0xff]  }
  0x11   : > { %v339_v30 = vpack.c.bf16 %v338_v27, %v337_v26  ;;  %v1172_v36 = vld [vmem:[%s1467_s5] ss:$8 sps:$4 sm:$0xff]   ;;  %v1174_v37 = vld [vmem:[%s1467_s5 + $0x4] ss:$8 sps:$4 sm:$0xff]   ;;  %v1177_v59 = vld [vmem:[%s1467_s5 + $0x14] ss:$8 sps:$4 sm:$0xff]  }
  0x12   : > { %v356_v41 = vld [vmem:[%s1464_s2] sm:$0x3]  ;;  %v1175_v60 = vld [vmem:[%s1467_s5 + $0x10] ss:$8 sps:$4 sm:$0xff]   ;;  %v1182_v3 = vld [vmem:[%s1469_s7 + $0x48] sm:$0xff]  }
  0x13   : > { %455 = vmatpush1.bf16.msra.mxu0 %v1143_v8  ;;  %1084 = vmatpush3.bf16.msra.mxu1 %v1161_v19  ;;  %v361_v43 = vrot.slane %v356_v41, %v360_v40  ;;  %v365_v44 = vrot.slane %v356_v41, %v364_v42  ;;  %v678_v61 = vld [vmem:[%s1467_s5 + $0x20] sm:$0xff]  ;;  %v1183_v4 = vld [vmem:[%s1469_s7 + $0x8] sm:$0xff]   ;;  %v1184_v5 = vld [vmem:[%s1469_s7 + $0x50] sm:$0xff]  }
  0x14   : > { %456 = vmatprep.subr.bf16.mxu0 %v1144_v9  ;;  %1085 = vmatprep.subr.bf16.mxu1 %v1162_v20  ;;  %v1057_v62 = vcombine.high %v678_v61, %v678_v61  ;;  %v1056_v63 = vcombine.low %v678_v61, %v678_v61  ;;  %v1180_v1 = vld [vmem:[%s1469_s7 + $0x40] sm:$0xff]   ;;  %v1185_v6 = vld [vmem:[%s1469_s7 + $0x10] sm:$0xff]   ;;  %v1186_v7 = vld [vmem:[%s1469_s7 + $0x58] sm:$0xff]  }
  0x15   : > { %v1187_v8 = vld [vmem:[%s1469_s7 + $0x18] sm:$0xff]   ;;  %v1188_v9 = vld [vmem:[%s1469_s7 + $0x60] sm:$0xff]  }
  0x16   : > { %v722_v0 = vsel %vm720_vm0, %v1056_v63, 0  ;;  %v1189_v10 = vld [vmem:[%s1469_s7 + $0x20] sm:$0xff]   ;;  %v1195_v26 = vld [vmem:[%s1469_s7 + $0x38] sm:$0xff]  }
  0x17   : > { %457 = vmatpush1.bf16.msra.mxu0 %v1146_v11  ;;  %1086 = vmatpush3.bf16.msra.mxu1 %v1163_v23  ;;  %v1190_v11 = vld [vmem:[%s1469_s7 + $0x68] sm:$0xff]   ;;  %v1035_v16 = vld [vmem:[%s1466_s4] ss:$0 sm:$0xff]  ;;  %v1192_v23 = vld [vmem:[%s1469_s7 + $0x70] sm:$0xff]  }
  0x18   : > { %458 = vmatprep.subr.bf16.mxu0 %v1147_v13  ;;  %1087 = vmatprep.subr.bf16.mxu1 %v1164_v24  ;;  %v1193_v24 = vld [vmem:[%s1469_s7 + $0x30] sm:$0xff]   ;;  %v679_v27 = vld [vmem:[%s1468_s6] sm:$0x3] }
  0x19   : > { %v1060_v39 = vld [vmem:[%s1470_s8] ss:$0 sm:$0xff] }
  0x1b   : > { %459 = vmatpush1.bf16.msra.mxu0 %v1149_v17  ;;  %1088 = vmatpush3.bf16.msra.mxu1 %v1165_v28  ;;  %v684_v28 = vrot.slane %v679_v27, %v360_v40 }
  0x1c   : > { %460 = vmatprep.subr.bf16.mxu0 %v1150_v18  ;;  %1089 = vmatprep.subr.bf16.mxu1 %v1166_v29  ;;  %v688_v29 = vrot.slane %v679_v27, %v364_v42 }
  0x1f   : > { %461 = vmatpush1.bf16.msra.mxu0 %v1152_v21  ;;  %1090 = vmatpush3.bf16.msra.mxu1 %v1167_v31 }
  0x20   : > { %462 = vmatprep.subr.bf16.mxu0 %v1153_v22  ;;  %1091 = vmatprep.subr.bf16.mxu1 %v1168_v32  ;;  %v1191_v22 = vld [vmem:[%s1469_s7 + $0x28] sm:$0xff]  }
  0x23   : > { %463 = vmatpush1.bf16.msra.mxu0 %v1155_v25  ;;  %1092 = vmatpush3.bf16.msra.mxu1 %v1169_v33  ;;  %v1194_v25 = vld [vmem:[%s1469_s7 + $0x78] sm:$0xff]  }
  0x24   : > { %1093 = vmatprep.subr.bf16.mxu1 %v1170_v34  ;;  %727 = vmatprep.subr.bf16.mxu0 %v1174_v37 }
  0x26   : > { %481 = vmatmul.mubr.bf16.vlgmr.msra.gmra.mrb[0].mxu0 %v339_v30 }
  0x27   : > { %759 = vmatprep.mubr.bf16.mxu0 %v1204_v2  ;;  %1094 = vmatpush3.bf16.msra.mxu1 %v1171_v35  ;;  %v1181_v2 = vld [vmem:[%s1469_s7] sm:$0xff]  }
  0x28   : > { %728 = vmatpush1.bf16.msra.mxu0 %v1172_v36  ;;  %1101 = vmatprep.subr.bf16.mxu1 %v1180_v1 }
  0x29   : > { %729 = vmatprep.subr.bf16.mxu0 %v1177_v59 }
  0x2c   : > { %730 = vmatpush1.bf16.msra.mxu0 %v1175_v60 }
  0x2d   : > { %1058 = vmatprep.subr.msk.bf16.mxu0 %vm720_vm0, %v1057_v62 }
  0x30   : > { %732 = vmatpush1.bf16.msra.mxu0 %v722_v0 }
  0xf9   : > { %v482_v45 = vpop.f32.mrb[0].mxu0 }
  0xfa   : > { %v483_v46 = vadd.f32 %v482_v45, %v361_v43  ;;  %v484_v47 = vpop.f32.mrb[1].mxu0 }
  0xfb   : > { %v485_v48 = vadd.f32 %v484_v47, %v365_v44  ;;  %v486_v49 = vpop.f32.mrb[2].mxu0 }
  0xfc   : > { %v487_v50 = vadd.f32 %v486_v49, %v361_v43  ;;  %v488_v51 = vpop.f32.mrb[3].mxu0  ;;  %v491_v53 = vmax.f32 %v483_v46, 0.0 }
  0xfd   : > { %v489_v52 = vadd.f32 %v488_v51, %v365_v44  ;;  %v492_v55 = vmax.f32 %v485_v48, 0.0 }
  0xfe   : > { %v493_v54 = vmax.f32 %v487_v50, 0.0 }
  0xff   : > { %v494_v56 = vmax.f32 %v489_v52, 0.0 }
 0x100   : > { %v495_v57 = vpack.c.bf16 %v493_v54, %v491_v53 }
 0x101   : > { %v496_v58 = vpack.c.bf16 %v494_v56, %v492_v55 }
 0x103   : > { %664 = vmatprep.mubr.bf16.mxu1 %v496_v58 }
 0x104   : > { %665 = vmatmul.mubr.bf16.vlgmr.msra.gmra.mrb[0].mxu1 %v495_v57 }
 0x105   : > { %1102 = vmatpush3.bf16.msra.mxu1 %v1181_v2 }
 0x106   : > { %1103 = vmatprep.subr.bf16.mxu1 %v1182_v3 }
 0x109   : > { %1104 = vmatpush3.bf16.msra.mxu1 %v1183_v4 }
 0x10a   : > { %1105 = vmatprep.subr.bf16.mxu1 %v1184_v5 }
 0x10d   : > { %1106 = vmatpush3.bf16.msra.mxu1 %v1185_v6 }
 0x10e   : > { %1107 = vmatprep.subr.bf16.mxu1 %v1186_v7 }
 0x111   : > { %1108 = vmatpush3.bf16.msra.mxu1 %v1187_v8 }
 0x112   : > { %1109 = vmatprep.subr.bf16.mxu1 %v1188_v9 }
 0x115   : > { %1110 = vmatpush3.bf16.msra.mxu1 %v1189_v10 }
 0x116   : > { %1111 = vmatprep.subr.bf16.mxu1 %v1190_v11 }
 0x119   : > { %1112 = vmatpush3.bf16.msra.mxu1 %v1191_v22 }
 0x11a   : > { %1113 = vmatprep.subr.bf16.mxu1 %v1192_v23 }
 0x11d   : > { %1114 = vmatpush3.bf16.msra.mxu1 %v1193_v24 }
 0x11e   : > { %1115 = vmatprep.subr.bf16.mxu1 %v1194_v25 }
 0x121   : > { %1116 = vmatpush3.bf16.msra.mxu1 %v1195_v26 }
 0x1d7   : > { %v1095_v12 = vpop.f32.mrb[0].mxu1 }
 0x1d8   : > { %v1096_v13 = vpop.f32.mrb[1].mxu1 }
 0x1d9   : > { %v1097_v14 = vadd.f32 %v1096_v13, %v1095_v12  ;;  %v1098_v15 = vpop.f32.mrb[2].mxu1 }
 0x1da   : > { %v1099_v17 = vpop.f32.mrb[3].mxu1 }
 0x1db   : > { %v1100_v18 = vadd.f32 %v1099_v17, %v1098_v15  ;;  %v667_v19 = vadd.f32 %v1097_v14, %v1035_v16 }
 0x1dd   : > { %v670_v20 = vadd.f32 %v1100_v18, %v1035_v16 }
 0x1df   : > { %v673_v21 = vpack.c.bf16 %v670_v20, %v667_v19 }
 0x1e1   : > { %1059 = vmatmul.mubr.msk.bf16.vlgmr.msra.gmra.mrb[4].mxu0 %vm716_vm1, %v673_v21 }
 0x2b4   : > { %v761_v30 = vpop.f32.mrb[4].mxu0 }
 0x2b5   : > { %v762_v31 = vadd.f32 %v761_v30, %v684_v28  ;;  %v763_v32 = vpop.f32.mrb[5].mxu0 }
 0x2b6   : > { %v764_v33 = vadd.f32 %v763_v32, %v688_v29  ;;  %v765_v34 = vpop.f32.mrb[6].mxu0 }
 0x2b7   : > { %v766_v35 = vadd.f32 %v765_v34, %v684_v28  ;;  %v767_v36 = vpop.f32.mrb[7].mxu0  ;;  %v770_v38 = vmax.f32 %v762_v31, 0.0 }
 0x2b8   : > { %v768_v37 = vadd.f32 %v767_v36, %v688_v29  ;;  %v771_v43 = vmax.f32 %v764_v33, 0.0 }
 0x2b9   : > { %v772_v41 = vmax.f32 %v766_v35, 0.0 }
 0x2ba   : > { %v773_v44 = vmax.f32 %v768_v37, 0.0 }
 0x2bb   : > { %v774_v45 = vpack.c.bf16 %v772_v41, %v770_v38 }
 0x2bc   : > { %v775_v46 = vpack.c.bf16 %v773_v44, %v771_v43 }
 0x2be   : > { %943 = vmatprep.mubr.bf16.mxu1 %v775_v46 }
 0x2bf   : > { %944 = vmatmul.mubr.bf16.vlgmr.msra.gmra.mrb[4].mxu1 %v774_v45 }
 0x392   : > { %v1117_v40 = vpop.f32.mrb[4].mxu1 }
 0x393   : > { %v1118_v42 = vpop.f32.mrb[5].mxu1 }
 0x394   : > { %v1119_v47 = vadd.f32 %v1118_v42, %v1117_v40  ;;  %v1120_v48 = vpop.f32.mrb[6].mxu1 }
 0x395   : > { %v1121_v49 = vpop.f32.mrb[7].mxu1 }
 0x396   : > { %v946_v50 = vadd.f32 %v1119_v47, %v1060_v39  ;;  %v1122_v51 = vadd.f32 %v1121_v49, %v1120_v48 }
 0x398   : > { %952 = vst [vmem:[%s334_s21] sm:$0xff] %v946_v50  ;;  %v949_v52 = vadd.f32 %v1122_v51, %v1060_v39 }
 0x39a   : > { %953 = vst [vmem:[%s334_s21 + $0x8] sm:$0xff] %v949_v52 }
 0x39b PF: > { %s19_s30 = sadd.s32 1, %s1202_s30  }
 0x39c   : > { %p16_p4 = scmp.ge.s32.totalorder %s19_s30, 4  }
 0x39e   :  { %18 = sbr.rel (!%p16_p4) target bundleno = 1 (0x1), region = 86 }

// kernel: autoencoder_forward.1
= control target key start
LH: loop header
LB: loop body
LE: loop exit
PB: predicated region body
PF: predicated region fallthrough
CT: control target
= control target key end

     0   :  { %s1255_s30 = smov 0   ;;  %s1462_s0 = inlined_call_operand.vmem [shape: f32[32,128], index: 0, kind: input, shape index: {}]   ;;  %s1463_s1 = inlined_call_operand.vmem [shape: bf16[128,256], index: 1, kind: input, shape index: {}]   ;;  %s1464_s2 = inlined_call_operand.vmem [shape: f32[1,256], index: 2, kind: input, shape index: {}]   ;;  %s1465_s3 = inlined_call_operand.vmem [shape: bf16[256,40], index: 3, kind: input, shape index: {}]   ;;  %s1466_s4 = inlined_call_operand.vmem [shape: f32[1,40], index: 4, kind: input, shape index: {}]   ;;  %s1467_s5 = inlined_call_operand.vmem [shape: bf16[40,256], index: 5, kind: input, shape index: {}]   ;;  %s1468_s6 = inlined_call_operand.vmem [shape: f32[1,256], index: 6, kind: input, shape index: {}]   ;;  %s1469_s7 = inlined_call_operand.vmem [shape: bf16[256,128], index: 7, kind: input, shape index: {}]   ;;  %s1470_s8 = inlined_call_operand.vmem [shape: f32[1,128], index: 8, kind: input, shape index: {}]   ;;  %s1471_s9 = inlined_call_operand.vmem [shape: f32[32,128], index: 9, kind: output, shape index: {}]  }
   0x1 LB: > { %s1010_s10 = sadd.s32 4294967295, %s1202_s30   ;;  %p1014_p0 = scmp.ge.s32.totalorder %s1202_s30, 1  ;;  %s1202_s30 = sphi %s1255_s30, %s19_s30  }
   0x2   : > { %p288_p1 = scmp.lt.s32.totalorder %s1202_s30, 3 }
   0x4   : > { %p289_p2 = pnand %p1014_p0, %p288_p1 }
   0x5   : > { %v1132_v0 = vld [vmem:[%s1463_s1 + $0x4] ss:$8 sps:$4 sm:$0xff] (!%p289_p2)   ;;  %v1134_v1 = vld [vmem:[%s1463_s1] ss:$8 sps:$4 sm:$0xff] (!%p289_p2)   ;;  %v1204_v2 = vmov (!%p289_p2), 0   ;;  %s1015_s23 = sshll.u32 (!%p289_p2), %s1010_s10, 1  ;;  %v358_v38 = vlaneseq (!%p289_p2) }
   0x6   : > { %292 = sbr.rel (%p289_p2) target bundleno = 923 (0x39b), region = 56  ;;  %480 = vmatprep.mubr.bf16.mxu0 (!%p289_p2), %v1204_v2  ;;  %448 = vmatprep.subr.bf16.mxu0 (!%p289_p2), %v1132_v0  ;;  %v1135_v3 = vld [vmem:[%s1463_s1 + $0x14] ss:$8 sps:$4 sm:$0xff] (!%p289_p2)   ;;  %v1137_v4 = vld [vmem:[%s1463_s1 + $0x10] ss:$8 sps:$4 sm:$0xff] (!%p289_p2)   ;;  %p325_p3 = scmp.lt.s32.totalorder (!%p289_p2), %s1015_s23, 3 }
   0x7   : > { %449 = vmatpush1.bf16.msra.mxu0 (!%p289_p2), %v1134_v1  ;;  %v1138_v5 = vld [vmem:[%s1463_s1 + $0x24] ss:$8 sps:$4 sm:$0xff] (!%p289_p2)   ;;  %v1140_v6 = vld [vmem:[%s1463_s1 + $0x20] ss:$8 sps:$4 sm:$0xff] (!%p289_p2)   ;;  %v1141_v7 = vld [vmem:[%s1463_s1 + $0x34] ss:$8 sps:$4 sm:$0xff] (!%p289_p2)  }
   0x8   : > { %450 = vmatprep.subr.bf16.mxu0 (!%p289_p2), %v1135_v3  ;;  %v1143_v8 = vld [vmem:[%s1463_s1 + $0x30] ss:$8 sps:$4 sm:$0xff] (!%p289_p2)   ;;  %v1144_v9 = vld [vmem:[%s1463_s1 + $0x44] ss:$8 sps:$4 sm:$0xff] (!%p289_p2)   ;;  %v1146_v11 = vld [vmem:[%s1463_s1 + $0x40] ss:$8 sps:$4 sm:$0xff] (!%p289_p2)  }
   0x9   : > { %v1156_v10 = vld [vmem:[%s1465_s3 + $0x40] sm:$0xff] (!%p289_p2)   ;;  %v1147_v13 = vld [vmem:[%s1463_s1 + $0x54] ss:$8 sps:$4 sm:$0xff] (!%p289_p2)   ;;  %v1158_v14 = vld [vmem:[%s1465_s3 + $0x48] sm:$0xff] (!%p289_p2)   ;;  %v1373_v39 = vshrl.u32 (!%p289_p2), %v358_v38, 7  ;;  %vm720_vm0 = vcmask (!%p289_p2), 1043456  }
   0xa   : > { %v1157_v12 = vld [vmem:[%s1465_s3] sm:$0xff] (!%p289_p2)   ;;  %1079 = vmatprep.subr.bf16.mxu1 (!%p289_p2), %v1156_v10  ;;  %v1159_v15 = vld [vmem:[%s1465_s3 + $0x8] sm:$0xff] (!%p289_p2)   ;;  %v1160_v16 = vld [vmem:[%s1465_s3 + $0x50] sm:$0xff] (!%p289_p2)   ;;  %vm716_vm1 = vcmask (!%p289_p2), 326656  }
   0xb   : > { %451 = vmatpush1.bf16.msra.mxu0 (!%p289_p2), %v1137_v4  ;;  %1080 = vmatpush3.bf16.msra.mxu1 (!%p289_p2), %v1157_v12  ;;  %v1149_v17 = vld [vmem:[%s1463_s1 + $0x50] ss:$8 sps:$4 sm:$0xff] (!%p289_p2)   ;;  %v1150_v18 = vld [vmem:[%s1463_s1 + $0x64] ss:$8 sps:$4 sm:$0xff] (!%p289_p2)   ;;  %v1152_v21 = vld [vmem:[%s1463_s1 + $0x60] ss:$8 sps:$4 sm:$0xff] (!%p289_p2)  }
   0xc   : > { %452 = vmatprep.subr.bf16.mxu0 (!%p289_p2), %v1138_v5  ;;  %1081 = vmatprep.subr.bf16.mxu1 (!%p289_p2), %v1158_v14  ;;  %v1161_v19 = vld [vmem:[%s1465_s3 + $0x10] sm:$0xff] (!%p289_p2)   ;;  %v1162_v20 = vld [vmem:[%s1465_s3 + $0x58] sm:$0xff] (!%p289_p2)   ;;  %v1164_v24 = vld [vmem:[%s1465_s3 + $0x60] sm:$0xff] (!%p289_p2)   ;;  %v360_v40 = vsub.s32 (!%p289_p2), 0, %v1373_v39  ;;  %v364_v42 = vsub.s32 (!%p289_p2), 1, %v1373_v39 }
   0xd   : > { %s1473_s23 = smov (!%p325_p3, %s1015_s23), 3  ;;  %v1153_v22 = vld [vmem:[%s1463_s1 + $0x74] ss:$8 sps:$4 sm:$0xff]   ;;  %v1155_v25 = vld [vmem:[%s1463_s1 + $0x70] ss:$8 sps:$4 sm:$0xff]   ;;  %v1165_v28 = vld [vmem:[%s1465_s3 + $0x20] sm:$0xff]  }
   0xe   : > { %s1016_s29 = sshll.u32 %s1473_s23, 3  ;;  %v1163_v23 = vld [vmem:[%s1465_s3 + $0x18] sm:$0xff]   ;;  %v1166_v29 = vld [vmem:[%s1465_s3 + $0x68] sm:$0xff]   ;;  %v1168_v32 = vld [vmem:[%s1465_s3 + $0x70] sm:$0xff]  }
   0xf   : > { %453 = vmatpush1.bf16.msra.mxu0 %v1140_v6  ;;  %1082 = vmatpush3.bf16.msra.mxu1 %v1159_v15  ;;  %s328_s20 = scalar_lea.vmem %s1462_s0, %s1016_s29  ;;  %v1167_v31 = vld [vmem:[%s1465_s3 + $0x28] sm:$0xff]   ;;  %v1169_v33 = vld [vmem:[%s1465_s3 + $0x30] sm:$0xff]   ;;  %v1170_v34 = vld [vmem:[%s1465_s3 + $0x78] sm:$0xff]   ;;  %s334_s21 = scalar_lea.vmem %s1471_s9, %s1016_s29 }
  0x10   : > { %454 = vmatprep.subr.bf16.mxu0 %v1141_v7  ;;  %1083 = vmatprep.subr.bf16.mxu1 %v1160_v16  ;;  %v337_v26 = vld [vmem:[%s328_s20] sm:$0xff]  ;;  %v338_v27 = vld [vmem:[%s328_s20 + $0x8] sm:$0xff]  ;;  %v1171_v35 = vld [vmem:[%s1465_s3 + $0x38] sm:$0xff]  }
  0x11   : > { %v339_v30 = vpack.c.bf16 %v338_v27, %v337_v26  ;;  %v1172_v36 = vld [vmem:[%s1467_s5] ss:$8 sps:$4 sm:$0xff]   ;;  %v1174_v37 = vld [vmem:[%s1467_s5 + $0x4] ss:$8 sps:$4 sm:$0xff]   ;;  %v1177_v59 = vld [vmem:[%s1467_s5 + $0x14] ss:$8 sps:$4 sm:$0xff]  }
  0x12   : > { %v356_v41 = vld [vmem:[%s1464_s2] sm:$0x3]  ;;  %v1175_v60 = vld [vmem:[%s1467_s5 + $0x10] ss:$8 sps:$4 sm:$0xff]   ;;  %v1182_v3 = vld [vmem:[%s1469_s7 + $0x48] sm:$0xff]  }
  0x13   : > { %455 = vmatpush1.bf16.msra.mxu0 %v1143_v8  ;;  %1084 = vmatpush3.bf16.msra.mxu1 %v1161_v19  ;;  %v361_v43 = vrot.slane %v356_v41, %v360_v40  ;;  %v365_v44 = vrot.slane %v356_v41, %v364_v42  ;;  %v678_v61 = vld [vmem:[%s1467_s5 + $0x20] sm:$0xff]  ;;  %v1183_v4 = vld [vmem:[%s1469_s7 + $0x8] sm:$0xff]   ;;  %v1184_v5 = vld [vmem:[%s1469_s7 + $0x50] sm:$0xff]  }
  0x14   : > { %456 = vmatprep.subr.bf16.mxu0 %v1144_v9  ;;  %1085 = vmatprep.subr.bf16.mxu1 %v1162_v20  ;;  %v1057_v62 = vcombine.high %v678_v61, %v678_v61  ;;  %v1056_v63 = vcombine.low %v678_v61, %v678_v61  ;;  %v1180_v1 = vld [vmem:[%s1469_s7 + $0x40] sm:$0xff]   ;;  %v1185_v6 = vld [vmem:[%s1469_s7 + $0x10] sm:$0xff]   ;;  %v1186_v7 = vld [vmem:[%s1469_s7 + $0x58] sm:$0xff]  }
  0x15   : > { %v1187_v8 = vld [vmem:[%s1469_s7 + $0x18] sm:$0xff]   ;;  %v1188_v9 = vld [vmem:[%s1469_s7 + $0x60] sm:$0xff]  }
  0x16   : > { %v722_v0 = vsel %vm720_vm0, %v1056_v63, 0  ;;  %v1189_v10 = vld [vmem:[%s1469_s7 + $0x20] sm:$0xff]   ;;  %v1195_v26 = vld [vmem:[%s1469_s7 + $0x38] sm:$0xff]  }
  0x17   : > { %457 = vmatpush1.bf16.msra.mxu0 %v1146_v11  ;;  %1086 = vmatpush3.bf16.msra.mxu1 %v1163_v23  ;;  %v1190_v11 = vld [vmem:[%s1469_s7 + $0x68] sm:$0xff]   ;;  %v1035_v16 = vld [vmem:[%s1466_s4] ss:$0 sm:$0xff]  ;;  %v1192_v23 = vld [vmem:[%s1469_s7 + $0x70] sm:$0xff]  }
  0x18   : > { %458 = vmatprep.subr.bf16.mxu0 %v1147_v13  ;;  %1087 = vmatprep.subr.bf16.mxu1 %v1164_v24  ;;  %v1193_v24 = vld [vmem:[%s1469_s7 + $0x30] sm:$0xff]   ;;  %v679_v27 = vld [vmem:[%s1468_s6] sm:$0x3] }
  0x19   : > { %v1060_v39 = vld [vmem:[%s1470_s8] ss:$0 sm:$0xff] }
  0x1b   : > { %459 = vmatpush1.bf16.msra.mxu0 %v1149_v17  ;;  %1088 = vmatpush3.bf16.msra.mxu1 %v1165_v28  ;;  %v684_v28 = vrot.slane %v679_v27, %v360_v40 }
  0x1c   : > { %460 = vmatprep.subr.bf16.mxu0 %v1150_v18  ;;  %1089 = vmatprep.subr.bf16.mxu1 %v1166_v29  ;;  %v688_v29 = vrot.slane %v679_v27, %v364_v42 }
  0x1f   : > { %461 = vmatpush1.bf16.msra.mxu0 %v1152_v21  ;;  %1090 = vmatpush3.bf16.msra.mxu1 %v1167_v31 }
  0x20   : > { %462 = vmatprep.subr.bf16.mxu0 %v1153_v22  ;;  %1091 = vmatprep.subr.bf16.mxu1 %v1168_v32  ;;  %v1191_v22 = vld [vmem:[%s1469_s7 + $0x28] sm:$0xff]  }
  0x23   : > { %463 = vmatpush1.bf16.msra.mxu0 %v1155_v25  ;;  %1092 = vmatpush3.bf16.msra.mxu1 %v1169_v33  ;;  %v1194_v25 = vld [vmem:[%s1469_s7 + $0x78] sm:$0xff]  }
  0x24   : > { %1093 = vmatprep.subr.bf16.mxu1 %v1170_v34  ;;  %727 = vmatprep.subr.bf16.mxu0 %v1174_v37 }
  0x26   : > { %481 = vmatmul.mubr.bf16.vlgmr.msra.gmra.mrb[0].mxu0 %v339_v30 }
  0x27   : > { %759 = vmatprep.mubr.bf16.mxu0 %v1204_v2  ;;  %1094 = vmatpush3.bf16.msra.mxu1 %v1171_v35  ;;  %v1181_v2 = vld [vmem:[%s1469_s7] sm:$0xff]  }
  0x28   : > { %728 = vmatpush1.bf16.msra.mxu0 %v1172_v36  ;;  %1101 = vmatprep.subr.bf16.mxu1 %v1180_v1 }
  0x29   : > { %729 = vmatprep.subr.bf16.mxu0 %v1177_v59 }
  0x2c   : > { %730 = vmatpush1.bf16.msra.mxu0 %v1175_v60 }
  0x2d   : > { %1058 = vmatprep.subr.msk.bf16.mxu0 %vm720_vm0, %v1057_v62 }
  0x30   : > { %732 = vmatpush1.bf16.msra.mxu0 %v722_v0 }
  0xf9   : > { %v482_v45 = vpop.f32.mrb[0].mxu0 }
  0xfa   : > { %v483_v46 = vadd.f32 %v482_v45, %v361_v43  ;;  %v484_v47 = vpop.f32.mrb[1].mxu0 }
  0xfb   : > { %v485_v48 = vadd.f32 %v484_v47, %v365_v44  ;;  %v486_v49 = vpop.f32.mrb[2].mxu0 }
  0xfc   : > { %v487_v50 = vadd.f32 %v486_v49, %v361_v43  ;;  %v488_v51 = vpop.f32.mrb[3].mxu0  ;;  %v491_v53 = vmax.f32 %v483_v46, 0.0 }
  0xfd   : > { %v489_v52 = vadd.f32 %v488_v51, %v365_v44  ;;  %v492_v55 = vmax.f32 %v485_v48, 0.0 }
  0xfe   : > { %v493_v54 = vmax.f32 %v487_v50, 0.0 }
  0xff   : > { %v494_v56 = vmax.f32 %v489_v52, 0.0 }
 0x100   : > { %v495_v57 = vpack.c.bf16 %v493_v54, %v491_v53 }
 0x101   : > { %v496_v58 = vpack.c.bf16 %v494_v56, %v492_v55 }
 0x103   : > { %664 = vmatprep.mubr.bf16.mxu1 %v496_v58 }
 0x104   : > { %665 = vmatmul.mubr.bf16.vlgmr.msra.gmra.mrb[0].mxu1 %v495_v57 }
 0x105   : > { %1102 = vmatpush3.bf16.msra.mxu1 %v1181_v2 }
 0x106   : > { %1103 = vmatprep.subr.bf16.mxu1 %v1182_v3 }
 0x109   : > { %1104 = vmatpush3.bf16.msra.mxu1 %v1183_v4 }
 0x10a   : > { %1105 = vmatprep.subr.bf16.mxu1 %v1184_v5 }
 0x10d   : > { %1106 = vmatpush3.bf16.msra.mxu1 %v1185_v6 }
 0x10e   : > { %1107 = vmatprep.subr.bf16.mxu1 %v1186_v7 }
 0x111   : > { %1108 = vmatpush3.bf16.msra.mxu1 %v1187_v8 }
 0x112   : > { %1109 = vmatprep.subr.bf16.mxu1 %v1188_v9 }
 0x115   : > { %1110 = vmatpush3.bf16.msra.mxu1 %v1189_v10 }
 0x116   : > { %1111 = vmatprep.subr.bf16.mxu1 %v1190_v11 }
 0x119   : > { %1112 = vmatpush3.bf16.msra.mxu1 %v1191_v22 }
 0x11a   : > { %1113 = vmatprep.subr.bf16.mxu1 %v1192_v23 }
 0x11d   : > { %1114 = vmatpush3.bf16.msra.mxu1 %v1193_v24 }
 0x11e   : > { %1115 = vmatprep.subr.bf16.mxu1 %v1194_v25 }
 0x121   : > { %1116 = vmatpush3.bf16.msra.mxu1 %v1195_v26 }
 0x1d7   : > { %v1095_v12 = vpop.f32.mrb[0].mxu1 }
 0x1d8   : > { %v1096_v13 = vpop.f32.mrb[1].mxu1 }
 0x1d9   : > { %v1097_v14 = vadd.f32 %v1096_v13, %v1095_v12  ;;  %v1098_v15 = vpop.f32.mrb[2].mxu1 }
 0x1da   : > { %v1099_v17 = vpop.f32.mrb[3].mxu1 }
 0x1db   : > { %v1100_v18 = vadd.f32 %v1099_v17, %v1098_v15  ;;  %v667_v19 = vadd.f32 %v1097_v14, %v1035_v16 }
 0x1dd   : > { %v670_v20 = vadd.f32 %v1100_v18, %v1035_v16 }
 0x1df   : > { %v673_v21 = vpack.c.bf16 %v670_v20, %v667_v19 }
 0x1e1   : > { %1059 = vmatmul.mubr.msk.bf16.vlgmr.msra.gmra.mrb[4].mxu0 %vm716_vm1, %v673_v21 }
 0x2b4   : > { %v761_v30 = vpop.f32.mrb[4].mxu0 }
 0x2b5   : > { %v762_v31 = vadd.f32 %v761_v30, %v684_v28  ;;  %v763_v32 = vpop.f32.mrb[5].mxu0 }
 0x2b6   : > { %v764_v33 = vadd.f32 %v763_v32, %v688_v29  ;;  %v765_v34 = vpop.f32.mrb[6].mxu0 }
 0x2b7   : > { %v766_v35 = vadd.f32 %v765_v34, %v684_v28  ;;  %v767_v36 = vpop.f32.mrb[7].mxu0  ;;  %v770_v38 = vmax.f32 %v762_v31, 0.0 }
 0x2b8   : > { %v768_v37 = vadd.f32 %v767_v36, %v688_v29  ;;  %v771_v43 = vmax.f32 %v764_v33, 0.0 }
 0x2b9   : > { %v772_v41 = vmax.f32 %v766_v35, 0.0 }
 0x2ba   : > { %v773_v44 = vmax.f32 %v768_v37, 0.0 }
 0x2bb   : > { %v774_v45 = vpack.c.bf16 %v772_v41, %v770_v38 }
 0x2bc   : > { %v775_v46 = vpack.c.bf16 %v773_v44, %v771_v43 }
 0x2be   : > { %943 = vmatprep.mubr.bf16.mxu1 %v775_v46 }
 0x2bf   : > { %944 = vmatmul.mubr.bf16.vlgmr.msra.gmra.mrb[4].mxu1 %v774_v45 }
 0x392   : > { %v1117_v40 = vpop.f32.mrb[4].mxu1 }
 0x393   : > { %v1118_v42 = vpop.f32.mrb[5].mxu1 }
 0x394   : > { %v1119_v47 = vadd.f32 %v1118_v42, %v1117_v40  ;;  %v1120_v48 = vpop.f32.mrb[6].mxu1 }
 0x395   : > { %v1121_v49 = vpop.f32.mrb[7].mxu1 }
 0x396   : > { %v946_v50 = vadd.f32 %v1119_v47, %v1060_v39  ;;  %v1122_v51 = vadd.f32 %v1121_v49, %v1120_v48 }
 0x398   : > { %952 = vst [vmem:[%s334_s21] sm:$0xff] %v946_v50  ;;  %v949_v52 = vadd.f32 %v1122_v51, %v1060_v39 }
 0x39a   : > { %953 = vst [vmem:[%s334_s21 + $0x8] sm:$0xff] %v949_v52 }
 0x39b PF: > { %s19_s30 = sadd.s32 1, %s1202_s30  }
 0x39c   : > { %p16_p4 = scmp.ge.s32.totalorder %s19_s30, 4  }
 0x39e   :  { %18 = sbr.rel (!%p16_p4) target bundleno = 1 (0x1), region = 86 }

</bundles_post_ra>
